<compile_context>
chip_gen: v7x
topology: tpu7x:2x2x1
jax: 0.10.0
libtpu: 0.0.40
codegen_flags: <defaults>
</compile_context>

<pallas_src>
import functools

import jax
import jax.numpy as jnp
from jax.experimental import pallas as pl
from jax.experimental.pallas import tpu as pltpu


def _round_up(x, m):
    return (x + m - 1) // m * m


def _cdiv(a, b):
    return (a + b - 1) // b


# ----------------------------------------------------------------------------
# Fused kernel:  z = (h @ W) [* norm] + b  ->  relu / concat epilogue
# ----------------------------------------------------------------------------
def _node_update_kernel(*refs, test, use_act, concat, out_pad):
    if test:
        h_ref, norm_ref, w_ref, b_ref, o_ref = refs
    else:
        h_ref, w_ref, b_ref, o_ref = refs
        norm_ref = None

    # One MXU pass on bf16 operands, f32 accumulate.
    z = jnp.dot(h_ref[...], w_ref[...], preferred_element_type=jnp.float32)
    if test:
        # Per-row scalar commuted past the matmul: (h*norm)@W == (h@W)*norm.
        # Applied here it stays in f32 and touches tm*out (not tm*in) elems.
        z = z * norm_ref[...]
    z = z + b_ref[...]

    if concat:
        # Fused concat epilogue [z | relu(z)]: two lane-aligned (128-mult) stores.
        o_ref[:, :out_pad] = z.astype(o_ref.dtype)
        o_ref[:, out_pad:] = jnp.maximum(z, 0.0).astype(o_ref.dtype)
    else:
        if use_act:
            z = jnp.maximum(z, 0.0)
        o_ref[...] = z.astype(o_ref.dtype)


# ----------------------------------------------------------------------------
# Wrapper
# ----------------------------------------------------------------------------
def node_update(h, w, b, norm=None, *, activation="relu", test=False,
                concat=False, compute_dtype=jnp.bfloat16, out_dtype=None):
    """Fused NodeUpdate forward.

    h:    [N, in_feats]          node features
    w:    [in_feats, out_feats]  (== torch Linear weight.T)
    b:    [out_feats]
    norm: [N, 1] or [N]          per-node degree normalization (test=True only)
    activation: "relu" or None   (concat mode applies relu, as in the module)
    compute_dtype: MXU operand dtype for h / W   (default bf16)
    out_dtype:     kernel output dtype           (default: h.dtype)
    """
    if activation not in (None, "relu"):
        raise NotImplementedError("only relu / None activations are supported")
    n, in_feats = h.shape
    assert w.shape[0] == in_feats
    out_feats = w.shape[1]
    out_dtype = h.dtype if out_dtype is None else jnp.dtype(out_dtype)
    f32 = jnp.float32

    # Only W / b columns are padded (weight-sized, keeps output stores
    # lane-dense); h, norm and the row count are used as-is.
    out_pad = _round_up(out_feats, 128)
    width = 2 * out_pad if concat else out_pad

    h_c = h.astype(compute_dtype)
    w_c = w.astype(compute_dtype)
    if out_pad != out_feats:
        w_c = jnp.zeros((in_feats, out_pad), compute_dtype).at[:, :out_feats].set(w_c)
        b_p = jnp.zeros((1, out_pad), f32).at[0, :out_feats].set(b.astype(f32))
    else:
        b_p = b.astype(f32).reshape(1, out_feats)

    # ---- VMEM budgeting / row-tile selection -------------------------------
    comp_bytes = jnp.dtype(compute_dtype).itemsize
    out_bytes = jnp.dtype(out_dtype).itemsize
    # Resident W / b (constant index_map) counted double-buffered by default.
    resident = 2 * (in_feats * out_pad * comp_bytes + out_pad * 4)
    row_bytes = 2 * (in_feats * comp_bytes          # h tile (double-buffered)
                     + (4 if test else 0)           # norm tile
                     + width * out_bytes)           # output tile

    vmem_budget = 14 * 1024 * 1024     # fits v5e's 16 MiB default scoped VMEM
    vmem_limit = None
    if resident + 16 * row_bytes > vmem_budget:
        # Very large weights: widen the scoped window (< v7x's 64 MiB physical).
        # TODO(synk): tile W over output columns / add a K reduction grid axis
        # for very large feature dims instead of relying on a bigger window.
        vmem_budget = 44 * 1024 * 1024
        vmem_limit = 48 * 1024 * 1024

    cand = 1024                         # largest row tile that fits the budget
    while cand > 16 and resident + cand * row_bytes > vmem_budget:
        cand //= 2

    if n <= cand:
        if n >= 32:
            # >=2 grid steps so both v7x TensorCores get work (parallel axis).
            tm = min(cand, _round_up(_cdiv(n, 2), 16))
        else:
            tm = n                      # single block; full row dim is legal
    else:
        tm = cand
    grid = (_cdiv(n, tm),)              # partial last block is masked by Pallas

    # ---- pallas_call --------------------------------------------------------
    kernel = functools.partial(
        _node_update_kernel, test=test, use_act=(activation is not None),
        concat=concat, out_pad=out_pad)

    in_specs = [pl.BlockSpec((tm, in_feats), lambda i: (i, 0))]      # h rows
    operands = [h_c]
    if test:
        if norm is None:
            raise ValueError("test=True requires `norm`")
        in_specs.append(pl.BlockSpec((tm, 1), lambda i: (i, 0)))     # norm rows
        operands.append(jnp.reshape(norm, (n, 1)).astype(f32))
    in_specs += [
        pl.BlockSpec((in_feats, out_pad), lambda i: (0, 0)),         # W (resident)
        pl.BlockSpec((1, out_pad), lambda i: (0, 0)),                # b (resident)
    ]
    operands += [w_c, b_p]

    out_p = pl.pallas_call(
        kernel,
        out_shape=jax.ShapeDtypeStruct((n, width), out_dtype),
        grid=grid,
        in_specs=in_specs,
        out_specs=pl.BlockSpec((tm, width), lambda i: (i, 0)),
        compiler_params=pltpu.CompilerParams(
            dimension_semantics=("parallel",),     # rows shard across v7x TCs
            vmem_limit_bytes=vmem_limit),
    )(*operands)

    # Wrapper-side column slicing only when out_feats isn't 128-aligned.
    if out_pad == out_feats:
        return out_p
    if concat:
        return jnp.concatenate(
            [out_p[:, :out_feats], out_p[:, out_pad:out_pad + out_feats]],
            axis=1)
    return out_p[:, :out_feats]


# ----------------------------------------------------------------------------
if __name__ == "__main__":
    n_nodes, in_feats, out_feats = 8, 32, 32

    key = jax.random.PRNGKey(0)
    kh, kn, kw, kb = jax.random.split(key, 4)

    h = jax.random.normal(kh, (n_nodes, in_feats), jnp.float32)
    # DGL-style per-node degree normalization scalar
    norm = jax.random.uniform(kn, (n_nodes, 1), jnp.float32, 0.1, 1.0)
    # nn.Linear init: U(-1/sqrt(in), 1/sqrt(in)); w is torch weight.T
    limit = 1.0 / float(in_feats) ** 0.5
    w = jax.random.uniform(kw, (in_feats, out_feats), jnp.float32, -limit, limit)
    b = jax.random.uniform(kb, (out_feats,), jnp.float32, -limit, limit)

    # Reference uses the same bf16-rounded MXU operands as the kernel.
    hb = h.astype(jnp.bfloat16).astype(jnp.float32)
    wb = w.astype(jnp.bfloat16).astype(jnp.float32)
    z = jnp.dot(hb, wb, precision=jax.lax.Precision.HIGHEST)

    # config 1: test=True, concat=True (norm scale + fused concat epilogue)
    fwd_concat = jax.jit(functools.partial(
        node_update, activation="relu", test=True, concat=True))
    out1 = fwd_concat(h, w, b, norm)
    jax.block_until_ready(out1)
    z1 = z * norm + b
    ref1 = jnp.concatenate([z1, jnp.maximum(z1, 0.0)], axis=1)
    assert out1.shape == (n_nodes, 2 * out_feats)
    assert jnp.allclose(out1, ref1, atol=1e-4, rtol=1e-4)

    # config 2: plain linear + relu (test=False, concat=False)
    fwd_relu = jax.jit(functools.partial(
        node_update, activation="relu", test=False, concat=False))
    out2 = fwd_relu(h, w, b)
    jax.block_until_ready(out2)
    ref2 = jnp.maximum(z + b, 0.0)
    assert jnp.allclose(out2, ref2, atol=1e-4, rtol=1e-4)

    # config 3: module defaults (activation=None, test=False, concat=False)
    fwd_lin = jax.jit(functools.partial(
        node_update, activation=None, test=False, concat=False))
    out3 = fwd_lin(h, w, b)
    jax.block_until_ready(out3)
    ref3 = z + b
    assert jnp.allclose(out3, ref3, atol=1e-4, rtol=1e-4)

    print("KERNEL_OK")
</pallas_src>

<mosaic_0001>
module attributes {stable_mosaic.version = 11 : i64} {
  func.func @_node_update_kernel(%arg0: i32, %arg1: memref<8x32xbf16, #tpu.memory_space<vmem>>, %arg2: memref<8x1xf32, #tpu.memory_space<vmem>>, %arg3: memref<32x128xbf16, #tpu.memory_space<vmem>>, %arg4: memref<1x128xf32, #tpu.memory_space<vmem>>, %arg5: memref<8x256xf32, #tpu.memory_space<vmem>>) attributes {dimension_semantics = [#tpu.dimension_semantics<parallel>], iteration_bounds = array<i64: 1>, scalar_prefetch = 0 : i64, scratch_operands = 0 : i64, tpu.core_type = #tpu.core_type<tc>, window_params = [{transform_indices = @transform_0, window_bounds = array<i64: 8, 32>}, {transform_indices = @transform_1, window_bounds = array<i64: 8, 1>}, {pipeline_mode = #tpu.pipeline_mode<synchronous>, transform_indices = @transform_2, window_bounds = array<i64: 32, 128>}, {pipeline_mode = #tpu.pipeline_mode<synchronous>, transform_indices = @transform_3, window_bounds = array<i64: 1, 128>}, {transform_indices = @transform_4, window_bounds = array<i64: 8, 256>}]} {
    %c0 = arith.constant 0 : index
    %c0_0 = arith.constant 0 : index
    %0 = vector.load %arg1[%c0, %c0_0] : memref<8x32xbf16, #tpu.memory_space<vmem>>, vector<8x32xbf16>
    %c0_1 = arith.constant 0 : index
    %c0_2 = arith.constant 0 : index
    %1 = vector.load %arg3[%c0_1, %c0_2] : memref<32x128xbf16, #tpu.memory_space<vmem>>, vector<32x128xbf16>
    %cst = arith.constant dense<0.000000e+00> : vector<8x128xf32>
    %2 = tpu.matmul %0, %1, %cst {dimension_numbers = #tpu.dot_dimension_numbers<[1], [0], [0], [1], [0, 0, 1, 1], [], []>} : vector<8x32xbf16>, vector<32x128xbf16>, vector<8x128xf32> -> vector<8x128xf32>
    %c0_3 = arith.constant 0 : index
    %c0_4 = arith.constant 0 : index
    %3 = vector.load %arg2[%c0_3, %c0_4] : memref<8x1xf32, #tpu.memory_space<vmem>>, vector<8x1xf32>
    %4 = vector.broadcast %3 : vector<8x1xf32> to vector<8x128xf32>
    %5 = arith.mulf %2, %4 : vector<8x128xf32>
    %c0_5 = arith.constant 0 : index
    %c0_6 = arith.constant 0 : index
    %6 = vector.load %arg4[%c0_5, %c0_6] : memref<1x128xf32, #tpu.memory_space<vmem>>, vector<1x128xf32>
    %7 = vector.broadcast %6 : vector<1x128xf32> to vector<8x128xf32>
    %8 = arith.addf %5, %7 : vector<8x128xf32>
    %c0_7 = arith.constant 0 : index
    %c0_8 = arith.constant 0 : index
    %9 = vector.load %arg5[%c0_7, %c0_8] : memref<8x256xf32, #tpu.memory_space<vmem>>, vector<8x128xf32>
    tpu.vector_store %arg5[%c0_7, %c0_8], %8 {strides = array<i32>} : memref<8x256xf32, #tpu.memory_space<vmem>>, vector<8x128xf32>,
    %cst_9 = arith.constant 0.000000e+00 : f32
    %10 = vector.broadcast %cst_9 : f32 to vector<8x128xf32>
    %11 = arith.maximumf %8, %10 : vector<8x128xf32>
    %c0_10 = arith.constant 0 : index
    %c128 = arith.constant 128 : index
    %12 = vector.load %arg5[%c0_10, %c128] : memref<8x256xf32, #tpu.memory_space<vmem>>, vector<8x128xf32>
    tpu.vector_store %arg5[%c0_10, %c128], %11 {strides = array<i32>} : memref<8x256xf32, #tpu.memory_space<vmem>>, vector<8x128xf32>,
    return
  }
  func.func @transform_0(%arg0: i32) -> (i32, i32) {
    %c0_i32 = arith.constant 0 : i32
    %c0_i32_0 = arith.constant 0 : i32
    return %arg0, %c0_i32 : i32, i32
  }
  func.func @transform_1(%arg0: i32) -> (i32, i32) {
    %c0_i32 = arith.constant 0 : i32
    %c0_i32_0 = arith.constant 0 : i32
    return %arg0, %c0_i32 : i32, i32
  }
  func.func @transform_2(%arg0: i32) -> (i32, i32) {
    %c0_i32 = arith.constant 0 : i32
    %c0_i32_0 = arith.constant 0 : i32
    %c0_i32_1 = arith.constant 0 : i32
    return %c0_i32, %c0_i32_0 : i32, i32
  }
  func.func @transform_3(%arg0: i32) -> (i32, i32) {
    %c0_i32 = arith.constant 0 : i32
    %c0_i32_0 = arith.constant 0 : i32
    %c0_i32_1 = arith.constant 0 : i32
    return %c0_i32, %c0_i32_0 : i32, i32
  }
  func.func @transform_4(%arg0: i32) -> (i32, i32) {
    %c0_i32 = arith.constant 0 : i32
    %c0_i32_0 = arith.constant 0 : i32
    return %arg0, %c0_i32 : i32, i32
  }
}

</mosaic_0001>

<bundles_post_ra>
// kernel: node_update.1
= control target key start
LH: loop header
LB: loop body
LE: loop exit
PB: predicated region body
PF: predicated region fallthrough
CT: control target
= control target key end

     0   :  { %v122_v0 = vmov 0.0   ;;  %vm123_vm0 = vmmov 0   ;;  %v124_v2 = vmov 0   ;;  %vm35_vm1 = vcmask 261120   ;;  %s171_s2 = inlined_call_operand.vmem [shape: bf16[32,128], index: 2, kind: input, shape index: {}]   ;;  %s172_s1 = inlined_call_operand.vmem [shape: f32[8,1], index: 1, kind: input, shape index: {}]   ;;  %s173_s0 = inlined_call_operand.vmem [shape: bf16[8,32], index: 0, kind: input, shape index: {}]   ;;  %s174_s3 = inlined_call_operand.vmem [shape: f32[1,128], index: 3, kind: input, shape index: {}]   ;;  %s175_s4 = inlined_call_operand.vmem [shape: f32[8,256], index: 4, kind: output, shape index: {}]  }
   0x1   :  { %108 = vmatprep.subr.bf16.mxu0 %v122_v0  ;;  %v120_v1 = vld [vmem:[%s171_s2] sm:$0xff]   ;;  %112 = vmatprep.mubr.msk.bf16.mxu0 %vm123_vm0, %v122_v0  ;;  %v121_v3 = vld [vmem:[%s171_s2 + $0x8] sm:$0xff]  }
   0x2   :  { %119 = vset.pattern.permute.xlu0 %v124_v2  ;;  %109 = vmatpush3.bf16.msra.mxu0 %v120_v1  ;;  %v79_v4 = vld [vmem:[%s172_s1] sm:$0xff] }
   0x3   :  { %110 = vmatprep.subr.bf16.mxu0 %v122_v0  ;;  %82 = vperm.xlu0 %119, %v79_v4   ;;  %v18_v5 = vld [vmem:[%s173_s0] sm:$0xf] }
   0x4   :  { %v104_v8 = vld [vmem:[%s174_s3] ss:$0 sm:$0xff] }
   0x6   :  { %111 = vmatpush3.bf16.msra.mxu0 %v121_v3 }
   0x9   :  { %113 = vmatmul.mubr.msk.bf16.vlgmr.msra.gmra.mrb[0].mxu0 %vm35_vm1, %v18_v5 }
  0x82   :  { %v83_v6 = vpop.permute.xlu0 %82 }
  0xdc   :  { %v73_v7 = vpop.f32.mrb[0].mxu0 }
  0xdd   :  { %v85_v9 = vmul.f32 %v83_v6, %v73_v7  ;;  %v114_v10 = vpop.f32.mrb[1].mxu0 }
  0xde   :  { %v76_v11 = vpop.f32.mrb[2].mxu0 }
  0xdf   :  { %v93_v12 = vadd.f32 %v104_v8, %v85_v9  ;;  %v115_v13 = vpop.f32.mrb[3].mxu0 }
  0xe1   :  { %94 = vst [vmem:[%s175_s4] sm:$0xff] %v93_v12  ;;  %v95_v14 = vmax.f32 %v93_v12, 0.0 }
  0xe3   :  { %96 = vst [vmem:[%s175_s4 + $0x8] sm:$0xff] %v95_v14 }

</bundles_post_ra>
